<compile_context>
chip_gen: v7x
topology: tpu7x:2x2x1
jax: 0.10.0
libtpu: 0.0.40
codegen_flags: <defaults>
</compile_context>

<pallas_src>
import jax
import jax.numpy as jnp
from jax.experimental import pallas as pl
from jax.experimental.pallas import tpu as pltpu


def _mock_module_kernel(x_ref, msum_ref, sx_ref, sy_ref, o_ref):
    # Single VPU pass: 4-way elementwise add over one lane-dense (1, N) tile.
    o_ref[...] = x_ref[...] + msum_ref[...] + sx_ref[...] + sy_ref[...]


def mock_module_init(module_state_x, module_state_y):
    """Fold the module's constant MockState (self.s.x + self.s.y) once at init."""
    return module_state_x + module_state_y


@jax.jit
def mock_module_forward(x, module_state_sum, state_x, state_y):
    """Pallas equivalent of MockModule.forward(x, s).

    module_state_sum : precomputed self.s.x + self.s.y (constant across calls)
    state_x, state_y : the MockState argument `s` (s[0] == s.x, s[1] == s.y)
    """
    out_shape = x.shape
    dtype = x.dtype
    n = x.size

    # Lane-dense layout: (10, 2) -> (1, 20). A contiguous reshape is pure
    # layout plumbing (no data movement) and avoids last-dim-2 masked stores.
    args = [a.reshape(1, n) for a in (x, module_state_sum, state_x, state_y)]

    flat_out = pl.pallas_call(
        _mock_module_kernel,
        out_shape=jax.ShapeDtypeStruct((1, n), dtype),
        in_specs=[pl.BlockSpec(memory_space=pltpu.VMEM) for _ in args],
        out_specs=pl.BlockSpec(memory_space=pltpu.VMEM),
        # Output reuses x's (reshaped) buffer: no separate output allocation.
        input_output_aliases={0: 0},
    )(*args)

    return flat_out.reshape(out_shape)


if __name__ == "__main__":
    key = jax.random.PRNGKey(0)
    k_x, k_mx, k_my, k_sx, k_sy = jax.random.split(key, 5)

    # Shapes implied by MockState: (10, 2) tensors; z (a float) is unused.
    x = jax.random.normal(k_x, (10, 2), dtype=jnp.float32)

    # Stand-ins for torch.randn(10, 2) module parameters / MockState defaults.
    module_state_x = jax.random.normal(k_mx, (10, 2), dtype=jnp.float32)
    module_state_y = jax.random.normal(k_my, (10, 2), dtype=jnp.float32)

    # The MockState argument `s` passed to forward (s[0] == s.x, s[1] == s.y).
    state_x = jax.random.normal(k_sx, (10, 2), dtype=jnp.float32)
    state_y = jax.random.normal(k_sy, (10, 2), dtype=jnp.float32)

    # "Module init": fold the constant module state once, outside the hot path.
    module_state_sum = jax.block_until_ready(
        mock_module_init(module_state_x, module_state_y)
    )

    out = mock_module_forward(x, module_state_sum, state_x, state_y)
    out = jax.block_until_ready(out)

    # Reference check in plain JAX.
    ref = x + module_state_x + module_state_y + state_x + state_y
    assert out.shape == (10, 2)
    assert out.dtype == jnp.float32
    assert jnp.allclose(out, ref, atol=1e-6), "Pallas kernel mismatch vs reference"

    print("KERNEL_OK")
</pallas_src>

<mosaic_0001>
module attributes {stable_mosaic.version = 11 : i64} {
  func.func @_mock_module_kernel(%arg0: memref<1x20xf32, #tpu.memory_space<vmem>>, %arg1: memref<1x20xf32, #tpu.memory_space<vmem>>, %arg2: memref<1x20xf32, #tpu.memory_space<vmem>>, %arg3: memref<1x20xf32, #tpu.memory_space<vmem>>, %arg4: memref<1x20xf32, #tpu.memory_space<vmem>>) attributes {dimension_semantics = [], scalar_prefetch = 0 : i64, scratch_operands = 0 : i64, tpu.core_type = #tpu.core_type<tc>} {
    %c0 = arith.constant 0 : index
    %c0_0 = arith.constant 0 : index
    %0 = vector.load %arg0[%c0, %c0_0] : memref<1x20xf32, #tpu.memory_space<vmem>>, vector<1x20xf32>
    %c0_1 = arith.constant 0 : index
    %c0_2 = arith.constant 0 : index
    %1 = vector.load %arg1[%c0_1, %c0_2] : memref<1x20xf32, #tpu.memory_space<vmem>>, vector<1x20xf32>
    %2 = arith.addf %0, %1 : vector<1x20xf32>
    %c0_3 = arith.constant 0 : index
    %c0_4 = arith.constant 0 : index
    %3 = vector.load %arg2[%c0_3, %c0_4] : memref<1x20xf32, #tpu.memory_space<vmem>>, vector<1x20xf32>
    %4 = arith.addf %2, %3 : vector<1x20xf32>
    %c0_5 = arith.constant 0 : index
    %c0_6 = arith.constant 0 : index
    %5 = vector.load %arg3[%c0_5, %c0_6] : memref<1x20xf32, #tpu.memory_space<vmem>>, vector<1x20xf32>
    %6 = arith.addf %4, %5 : vector<1x20xf32>
    %c0_7 = arith.constant 0 : index
    %c0_8 = arith.constant 0 : index
    %7 = vector.load %arg4[%c0_7, %c0_8] : memref<1x20xf32, #tpu.memory_space<vmem>>, vector<1x20xf32>
    tpu.vector_store %arg4[%c0_7, %c0_8], %6 {strides = array<i32>} : memref<1x20xf32, #tpu.memory_space<vmem>>, vector<1x20xf32>,
    return
  }
}

</mosaic_0001>

<bundles_post_ra>
// kernel: mock_module_forward.1
= control target key start
LH: loop header
LB: loop body
LE: loop exit
PB: predicated region body
PF: predicated region fallthrough
CT: control target
= control target key end

     0   :  { %vm24_vm0 = vcmask 155648   ;;  %s70_s0 = inlined_call_operand.vmem [shape: f32[1,20], index: 0, kind: input, shape index: {}, may-alias: {0,4}]   ;;  %s71_s1 = inlined_call_operand.vmem [shape: f32[1,20], index: 1, kind: input, shape index: {}]   ;;  %s72_s2 = inlined_call_operand.vmem [shape: f32[1,20], index: 2, kind: input, shape index: {}]   ;;  %s73_s3 = inlined_call_operand.vmem [shape: f32[1,20], index: 3, kind: input, shape index: {}]   ;;  %s74_s4 = inlined_call_operand.vmem [shape: f32[1,20], index: 4, kind: output, shape index: {}, may-alias: {0,4}]  }
   0x1   :  { %v17_v0 = vld [vmem:[%s70_s0] sm:$0x1] }
   0x2   :  { %v18_v1 = vld [vmem:[%s71_s1] sm:$0x1] }
   0x3   :  { %v20_v2 = vld [vmem:[%s72_s2] sm:$0x1]  ;;  %v19_v3 = vadd.f32 %v18_v1, %v17_v0 }
   0x4   :  { %v22_v4 = vld [vmem:[%s73_s3] sm:$0x1] }
   0x5   :  { %v21_v5 = vadd.f32 %v20_v2, %v19_v3 }
   0x7   :  { %v23_v6 = vadd.f32 %v22_v4, %v21_v5 }
   0x9   :  { %25 = vst.msk [vmem:[%s74_s4] sm:$0x1] %vm24_vm0, %v23_v6 }

</bundles_post_ra>
